<compile_context>
chip_gen: v7x
topology: tpu7x:2x2x1
jax: 0.10.0
libtpu: 0.0.40
codegen_flags: <defaults>
</compile_context>

<pallas_src>
import functools
import math

import jax
import jax.numpy as jnp
from jax import lax
from jax.experimental import pallas as pl
from jax.experimental.pallas import tpu as pltpu

_LANE = 128
_BF16_SUBLANE = 16


def _round_up(n, m):
    return ((n + m - 1) // m) * m


def _pad_axis(a, axis, mult):
    pad = (-a.shape[axis]) % mult
    if pad == 0:
        return a
    widths = [(0, 0)] * a.ndim
    widths[axis] = (0, pad)
    return jnp.pad(a, widths)


def _gelu_exact(x):
    # PyTorch nn.GELU() default: exact erf-based GELU (semantic parity).
    return 0.5 * x * (1.0 + lax.erf(x * (1.0 / math.sqrt(2.0))))


def _gelu_tanh(x):
    # tanh approximation: exp/tanh execute on the otherwise-idle EUP slot,
    # relieving the VALU (biggest win on v5e).  Small numerics delta.
    c = math.sqrt(2.0 / math.pi)
    return 0.5 * x * (1.0 + jnp.tanh(c * (x + 0.044715 * (x * x * x))))


def _mlp_kernel(x_ref, w0_ref, w1_ref, w2_ref, o_ref, *, approx_gelu):
    gelu = _gelu_tanh if approx_gelu else _gelu_exact
    # bf16 operands on the MXU, f32 accumulation, f32 elementwise GELU.
    h = jnp.dot(x_ref[...], w0_ref[...], preferred_element_type=jnp.float32)
    h = gelu(h)
    h = jnp.dot(h.astype(jnp.bfloat16), w1_ref[...],
                preferred_element_type=jnp.float32)
    h = gelu(h)
    y = jnp.dot(h.astype(jnp.bfloat16), w2_ref[...],
                preferred_element_type=jnp.float32)
    o_ref[...] = y.astype(o_ref.dtype)


def _vmem_capacity_bytes():
    try:
        cap = getattr(pltpu.get_tpu_info(), "vmem_capacity_bytes", None)
        if cap:
            return int(cap)
    except Exception:
        pass
    return 64 * 1024 * 1024  # conservative: v7x per-TensorCore VMEM


def prepare_params(w0, w1, w2):
    """One-time prep: cast weights to bf16 and zero-pad feature dims.

    Zero rows/cols are inert (bias-free Linear, GELU(0)=0), so padding does not
    change results.  Hidden dim is padded to a multiple of 128 (lane-dense MXU
    tiles); the output dim is padded only when >= 128 — tiny outputs keep a
    full-dim unpadded store to avoid 8x-padded writes + a post-kernel slice.

    Returns ((w0p, w1p, w2p), out_dim).
    """
    din, h = w0.shape
    dout = w2.shape[1]
    assert w1.shape == (h, h) and w2.shape[0] == h

    w0p = _pad_axis(w0.astype(jnp.bfloat16), 1, _LANE)                    # (Din, H_p)
    w1p = _pad_axis(_pad_axis(w1.astype(jnp.bfloat16), 0, _LANE), 1, _LANE)
    w2p = _pad_axis(w2.astype(jnp.bfloat16), 0, _LANE)                    # (H_p, Dout[_p])
    if dout >= _LANE:
        w2p = _pad_axis(w2p, 1, _LANE)
    return (w0p, w1p, w2p), dout


def contrastive_head_forward(x, params, out_dim=None, *, block_b=None,
                             approx_gelu=False):
    """x: (B, Din); params from prepare_params(). Returns (B, out_dim)."""
    w0p, w1p, w2p = params
    B, Din = x.shape
    H_p = w0p.shape[1]
    Dout_p = w2p.shape[1]
    if out_dim is None:
        out_dim = Dout_p  # keep padded layout for downstream consumers
    assert w0p.shape[0] == Din and w1p.shape == (H_p, H_p) and w2p.shape[0] == H_p

    out_dtype = x.dtype
    # bf16 activations feed the MXU directly; callers passing bf16 skip this.
    if x.dtype != jnp.bfloat16:
        x = x.astype(jnp.bfloat16)

    out_itemsize = jnp.dtype(out_dtype).itemsize
    vmem_cap = _vmem_capacity_bytes()
    weight_bytes = 2 * (w0p.size + w1p.size + w2p.size)   # bf16, single buffer

    def vmem_est(bb):
        return (weight_bytes
                + 2 * bb * Din * 2               # x tile, double-buffered, bf16
                + 2 * bb * Dout_p * out_itemsize # out tile, double-buffered
                + 3 * bb * H_p * 4)              # f32 intermediates slack

    sub = _BF16_SUBLANE
    if block_b is None:
        # Generation-aware row cap; prefer >=2 grid steps so the "parallel"
        # batch axis can shard across v7x's two TensorCores.
        cap_rows = 1024 if vmem_cap >= 96 * 1024 * 1024 else 512
        if B <= sub:
            block_b = B                                   # single full-dim block
        else:
            target = min(cap_rows, _round_up(pl.cdiv(B, 2), sub))
            block_b = max(sub, min(target, (B // sub) * sub))
    assert block_b == B or block_b % 8 == 0

    # Shrink the batch tile if the footprint would overflow scoped VMEM.
    while block_b > sub and vmem_est(block_b) > int(0.8 * vmem_cap):
        block_b = max(sub, _round_up(block_b // 2, 8))

    est = vmem_est(block_b)
    if est > int(0.9 * vmem_cap):
        # TODO(synk): for very large hidden_dim (w1 alone ~2*H_p^2 bytes) tile
        # the H reduction with an f32 VMEM accumulator instead of keeping all
        # three weight matrices fully resident.
        raise ValueError(
            f"ContrastiveHead weights ({weight_bytes / 2**20:.1f} MiB bf16) do "
            f"not fit the fully-resident VMEM plan on this chip "
            f"({vmem_cap / 2**20:.0f} MiB VMEM); hidden-dim K-tiling not implemented.")

    vmem_limit = int(min(max(int(1.5 * est), 16 * 1024 * 1024),
                         int(0.9 * vmem_cap)))

    grid = (pl.cdiv(B, block_b),)
    flops = 2 * B * (Din * H_p + H_p * H_p + H_p * Dout_p)
    bytes_accessed = x.size * 2 + weight_bytes + B * Dout_p * out_itemsize

    # Note: if profiling shows exposed x DMA (small H, large Din), add
    # pipeline_mode=pl.Buffered(3) to the x BlockSpec — VMEM headroom exists
    # since the weights are single-buffered.
    out = pl.pallas_call(
        functools.partial(_mlp_kernel, approx_gelu=approx_gelu),
        out_shape=jax.ShapeDtypeStruct((B, Dout_p), out_dtype),
        grid=grid,
        in_specs=[
            # Activations: full Din extent (no padded HBM copy), batch-tiled.
            pl.BlockSpec((block_b, Din), lambda i: (i, 0)),
            # Weights: whole array resident in VMEM (constant block index =>
            # double-buffering would only waste VMEM).
            pl.BlockSpec(memory_space=pltpu.MemorySpace.VMEM),
            pl.BlockSpec(memory_space=pltpu.MemorySpace.VMEM),
            pl.BlockSpec(memory_space=pltpu.MemorySpace.VMEM),
        ],
        out_specs=pl.BlockSpec((block_b, Dout_p), lambda i: (i, 0)),
        compiler_params=pltpu.CompilerParams(
            dimension_semantics=("parallel",),
            vmem_limit_bytes=vmem_limit,
        ),
        cost_estimate=pl.CostEstimate(
            flops=flops,
            transcendentals=2 * B * H_p,
            bytes_accessed=bytes_accessed),
    )(x, w0p, w1p, w2p)

    if Dout_p != out_dim:
        out = out[:, :out_dim]
    return out


def _trunc_normal(key, shape, std=0.02, a=-2.0, b=2.0):
    # PyTorch trunc_normal_(std=0.02, a=-2, b=2): bounds are ABSOLUTE (i.e.
    # +/-100 sigma at std=0.02 — effectively an unclipped normal).
    return jax.random.truncated_normal(key, a / std, b / std, shape, jnp.float32) * std


def init_params(key, input_dim, output_dim, hidden_dim=2048):
    k0, k1, k2 = jax.random.split(key, 3)
    w0 = _trunc_normal(k0, (input_dim, hidden_dim))
    w1 = _trunc_normal(k1, (hidden_dim, hidden_dim))
    w2 = _trunc_normal(k2, (hidden_dim, output_dim))
    return w0, w1, w2


def _reference_f32(x, w0, w1, w2):
    h = _gelu_exact(x @ w0)
    h = _gelu_exact(h @ w1)
    return h @ w2


def _reference_matched(x, w0, w1, w2):
    # Same precision recipe as the kernel: bf16 matmul inputs, f32 accum/GELU.
    bf = jnp.bfloat16
    h = jnp.dot(x.astype(bf), w0.astype(bf), preferred_element_type=jnp.float32)
    h = _gelu_exact(h)
    h = jnp.dot(h.astype(bf), w1.astype(bf), preferred_element_type=jnp.float32)
    h = _gelu_exact(h)
    return jnp.dot(h.astype(bf), w2.astype(bf), preferred_element_type=jnp.float32)


if __name__ == "__main__":
    # Small shapes consistent with the module: batch=8, input_dim=32,
    # hidden_dim=64, output_dim=16.
    key = jax.random.PRNGKey(0)
    kx, kp = jax.random.split(key)

    B, Din, H, Dout = 8, 32, 64, 16
    x = jax.random.normal(kx, (B, Din), jnp.float32)
    w0, w1, w2 = init_params(kp, Din, Dout, hidden_dim=H)

    params, out_dim = prepare_params(w0, w1, w2)      # one-time pad + bf16 cast
    out = contrastive_head_forward(x, params, out_dim)
    out = jax.block_until_ready(out)
    assert out.shape == (B, Dout)

    # Primary check: matched-precision reference (same bf16/f32 recipe).
    ref_m = _reference_matched(x, w0, w1, w2)
    assert jnp.allclose(out.astype(jnp.float32), ref_m, atol=1e-4, rtol=1e-3), \
        "mismatch vs matched-precision reference"

    # Sanity check vs pure f32 reference (bf16 operands introduce small error;
    # tolerance would need widening as hidden_dim grows).
    ref_f32 = _reference_f32(x, w0, w1, w2)
    assert jnp.allclose(out.astype(jnp.float32), ref_f32, atol=2e-3, rtol=2e-2), \
        "mismatch vs f32 reference"

    print("KERNEL_OK")
</pallas_src>

<mosaic_0001>
module attributes {stable_mosaic.version = 11 : i64} {
  func.func @_mlp_kernel(%arg0: i32, %arg1: memref<8x32xbf16, #tpu.memory_space<vmem>>, %arg2: memref<32x128xbf16, #tpu.memory_space<vmem>>, %arg3: memref<128x128xbf16, #tpu.memory_space<vmem>>, %arg4: memref<128x16xbf16, #tpu.memory_space<vmem>>, %arg5: memref<8x16xf32, #tpu.memory_space<vmem>>) attributes {dimension_semantics = [#tpu.dimension_semantics<parallel>], iteration_bounds = array<i64: 1>, scalar_prefetch = 0 : i64, scratch_operands = 0 : i64, tpu.core_type = #tpu.core_type<tc>, window_params = [{transform_indices = @transform_0, window_bounds = array<i64: 8, 32>}, {pipeline_mode = #tpu.pipeline_mode<synchronous>, transform_indices = @transform_1, window_bounds = array<i64: 32, 128>}, {pipeline_mode = #tpu.pipeline_mode<synchronous>, transform_indices = @transform_2, window_bounds = array<i64: 128, 128>}, {pipeline_mode = #tpu.pipeline_mode<synchronous>, transform_indices = @transform_3, window_bounds = array<i64: 128, 16>}, {transform_indices = @transform_4, window_bounds = array<i64: 8, 16>}]} {
    %c0 = arith.constant 0 : index
    %c0_0 = arith.constant 0 : index
    %0 = vector.load %arg1[%c0, %c0_0] : memref<8x32xbf16, #tpu.memory_space<vmem>>, vector<8x32xbf16>
    %c0_1 = arith.constant 0 : index
    %c0_2 = arith.constant 0 : index
    %1 = vector.load %arg2[%c0_1, %c0_2] : memref<32x128xbf16, #tpu.memory_space<vmem>>, vector<32x128xbf16>
    %cst = arith.constant dense<0.000000e+00> : vector<8x128xf32>
    %2 = tpu.matmul %0, %1, %cst {dimension_numbers = #tpu.dot_dimension_numbers<[1], [0], [0], [1], [0, 0, 1, 1], [], []>} : vector<8x32xbf16>, vector<32x128xbf16>, vector<8x128xf32> -> vector<8x128xf32>
    %cst_3 = arith.constant 5.000000e-01 : f32
    %3 = vector.broadcast %cst_3 : f32 to vector<8x128xf32>
    %4 = arith.mulf %3, %2 : vector<8x128xf32>
    %cst_4 = arith.constant 0.707106769 : f32
    %5 = vector.broadcast %cst_4 : f32 to vector<8x128xf32>
    %6 = arith.mulf %2, %5 : vector<8x128xf32>
    %7 = math.erf %6 : vector<8x128xf32>
    %cst_5 = arith.constant 1.000000e+00 : f32
    %8 = vector.broadcast %cst_5 : f32 to vector<8x128xf32>
    %9 = arith.addf %8, %7 : vector<8x128xf32>
    %10 = arith.mulf %4, %9 : vector<8x128xf32>
    %11 = arith.truncf %10 : vector<8x128xf32> to vector<8x128xbf16>
    %c0_6 = arith.constant 0 : index
    %c0_7 = arith.constant 0 : index
    %12 = vector.load %arg3[%c0_6, %c0_7] : memref<128x128xbf16, #tpu.memory_space<vmem>>, vector<128x128xbf16>
    %cst_8 = arith.constant dense<0.000000e+00> : vector<8x128xf32>
    %13 = tpu.matmul %11, %12, %cst_8 {dimension_numbers = #tpu.dot_dimension_numbers<[1], [0], [0], [1], [0, 0, 1, 1], [], []>} : vector<8x128xbf16>, vector<128x128xbf16>, vector<8x128xf32> -> vector<8x128xf32>
    %cst_9 = arith.constant 5.000000e-01 : f32
    %14 = vector.broadcast %cst_9 : f32 to vector<8x128xf32>
    %15 = arith.mulf %14, %13 : vector<8x128xf32>
    %cst_10 = arith.constant 0.707106769 : f32
    %16 = vector.broadcast %cst_10 : f32 to vector<8x128xf32>
    %17 = arith.mulf %13, %16 : vector<8x128xf32>
    %18 = math.erf %17 : vector<8x128xf32>
    %cst_11 = arith.constant 1.000000e+00 : f32
    %19 = vector.broadcast %cst_11 : f32 to vector<8x128xf32>
    %20 = arith.addf %19, %18 : vector<8x128xf32>
    %21 = arith.mulf %15, %20 : vector<8x128xf32>
    %22 = arith.truncf %21 : vector<8x128xf32> to vector<8x128xbf16>
    %c0_12 = arith.constant 0 : index
    %c0_13 = arith.constant 0 : index
    %23 = vector.load %arg4[%c0_12, %c0_13] : memref<128x16xbf16, #tpu.memory_space<vmem>>, vector<128x16xbf16>
    %cst_14 = arith.constant dense<0.000000e+00> : vector<8x16xf32>
    %24 = tpu.matmul %22, %23, %cst_14 {dimension_numbers = #tpu.dot_dimension_numbers<[1], [0], [0], [1], [0, 0, 1, 1], [], []>} : vector<8x128xbf16>, vector<128x16xbf16>, vector<8x16xf32> -> vector<8x16xf32>
    %c0_15 = arith.constant 0 : index
    %c0_16 = arith.constant 0 : index
    %25 = vector.load %arg5[%c0_15, %c0_16] : memref<8x16xf32, #tpu.memory_space<vmem>>, vector<8x16xf32>
    tpu.vector_store %arg5[%c0_15, %c0_16], %24 {strides = array<i32>} : memref<8x16xf32, #tpu.memory_space<vmem>>, vector<8x16xf32>,
    return
  }
  func.func @transform_0(%arg0: i32) -> (i32, i32) {
    %c0_i32 = arith.constant 0 : i32
    %c0_i32_0 = arith.constant 0 : i32
    return %arg0, %c0_i32 : i32, i32
  }
  func.func @transform_1(%arg0: i32) -> (i32, i32) {
    %c0_i32 = arith.constant 0 : i32
    %c0_i32_0 = arith.constant 0 : i32
    %c0_i32_1 = arith.constant 0 : i32
    return %c0_i32, %c0_i32_0 : i32, i32
  }
  func.func @transform_2(%arg0: i32) -> (i32, i32) {
    %c0_i32 = arith.constant 0 : i32
    %c0_i32_0 = arith.constant 0 : i32
    %c0_i32_1 = arith.constant 0 : i32
    return %c0_i32, %c0_i32_0 : i32, i32
  }
  func.func @transform_3(%arg0: i32) -> (i32, i32) {
    %c0_i32 = arith.constant 0 : i32
    %c0_i32_0 = arith.constant 0 : i32
    %c0_i32_1 = arith.constant 0 : i32
    return %c0_i32, %c0_i32_0 : i32, i32
  }
  func.func @transform_4(%arg0: i32) -> (i32, i32) {
    %c0_i32 = arith.constant 0 : i32
    %c0_i32_0 = arith.constant 0 : i32
    return %arg0, %c0_i32 : i32, i32
  }
}

</mosaic_0001>

<bundles_post_ra>
// kernel: tpu_custom_call.1
= control target key start
LH: loop header
LB: loop body
LE: loop exit
PB: predicated region body
PF: predicated region fallthrough
CT: control target
= control target key end

     0   :  { %9 = vsyncpa [#allocation3], 0  ;;  %s625_s0 = inlined_call_operand.vmem [shape: bf16[8,32], index: 0, kind: input, shape index: {}]   ;;  %s626_s1 = inlined_call_operand.hbm [shape: bf16[32,128], index: 1, kind: input, shape index: {}]   ;;  %s627_s2 = inlined_call_operand.vmem [shape: bf16[128,128], index: 2, kind: input, shape index: {}]   ;;  %s628_s3 = inlined_call_operand.vmem [shape: bf16[128,16], index: 3, kind: input, shape index: {}]   ;;  %s629_s4 = inlined_call_operand.hbm [shape: f32[8,16], index: 4, kind: output, shape index: {}]  }
   0x1   :  { %10 = vsyncpa [#allocation4], 0  ;;  %s495_s15 = smov [#allocation2]   ;;  %s447_s19 = scalar_lea.hbm %s626_s1, 256 }
   0x2   :  { %s18_s16 = sshll.u32 %s495_s15, 4  ;;  %p448_p0 = scmp.ne.s32.totalorder %s626_s1, %s447_s19  ;;  %s19_s16 = int_to_ptr.vmem [resolvable:$true] %s18_s16 }
   0x3   :  { %p451_p1 = scmp.lt.u32.totalorder %s447_s19, %s626_s1 }
   0x5   :  { %p453_p2 = pnand %p451_p1, %p448_p0 }
   0x7   :  { %456 = shalt.err (!%p453_p2)
}
   0x8   :  { %s457_s24 = scalar_lea.vmem %s19_s16, 256  ;;  %p462_p4 = scmp.lt.s32.totalorder %s19_s16, %s19_s16 }
   0x9   :  { %p458_p3 = scmp.ne.s32.totalorder %s19_s16, %s457_s24  ;;  %p463_p5 = scmp.lt.s32.totalorder %s457_s24, %s457_s24 }
   0xb   :  { %p464_p6 = por %p463_p5, %p462_p4 }
   0xd   :  { %p465_p7 = pnand %p464_p6, %p458_p3 }
   0xf   :  { %468 = shalt.err (!%p465_p7)
}
  0x10   :  { %s496_s25 = smov 64   ;;  %s497_s26 = smov 4  }
  0x11   :  { %24 = dma.hbm_to_vmem [thread:$0]  %s626_s1, 256, %s19_s16, [#allocation3], %s496_s25, %s496_s25, %s497_s26  }
  0x12   :  { %491 = dma.done.wait [#allocation3], 256  }
  0x13   :  { %492 = vsyncadd [#allocation3], 4294967040  ;;  %v498_v0 = vmov 0.0   ;;  %vm499_vm0 = vmmov 0   ;;  %v425_v1 = vld [vmem:[#allocation2] sm:$0xff]   ;;  %v426_v2 = vld [vmem:[#allocation2 + $0x8] sm:$0xff]  }
  0x14   :  { %371 = vmatprep.subr.bf16.mxu0 %v498_v0  ;;  %375 = vmatprep.mubr.msk.bf16.mxu0 %vm499_vm0, %v498_v0  ;;  %v427_v3 = vld [vmem:[%s627_s2] sm:$0xff]   ;;  %vm50_vm1 = vcmask 261120   ;;  %v428_v5 = vld [vmem:[%s627_s2 + $0x8] sm:$0xff]   ;;  %v429_v6 = vld [vmem:[%s627_s2 + $0x10] sm:$0xff]   ;;  %s500_s7 = smov [#allocation5]   ;;  %vm314_vm2 = vcmask 130048  }
  0x15   :  { %379 = vmatprep.subr.bf16.mxu1 %v498_v0  ;;  %395 = vmatprep.mubr.msk.bf16.mxu1 %vm499_vm0, %v498_v0  ;;  %v33_v4 = vld [vmem:[%s625_s0] sm:$0xf]  ;;  %v430_v7 = vld [vmem:[%s627_s2 + $0x18] sm:$0xff]   ;;  %v432_v9 = vld [vmem:[%s627_s2 + $0x28] sm:$0xff]   ;;  %s322_s8 = sshll.u32 %s500_s7, 4  ;;  %s323_s8 = int_to_ptr.vmem [resolvable:$true] %s322_s8 }
  0x16   :  { %372 = vmatpush3.bf16.msra.mxu0 %v425_v1  ;;  %380 = vmatpush3.bf16.msra.mxu1 %v427_v3  ;;  %v431_v8 = vld [vmem:[%s627_s2 + $0x20] sm:$0xff]   ;;  %v433_v10 = vld [vmem:[%s627_s2 + $0x30] sm:$0xff]   ;;  %v434_v11 = vld [vmem:[%s627_s2 + $0x38] sm:$0xff]   ;;  %p474_p9 = scmp.lt.s32.totalorder %s323_s8, %s323_s8 }
  0x17   :  { %373 = vmatprep.subr.bf16.mxu0 %v498_v0  ;;  %381 = vmatprep.subr.bf16.mxu1 %v498_v0  ;;  %v435_v12 = vld [vmem:[%s628_s3] sm:$0xff]   ;;  %v436_v13 = vld [vmem:[%s628_s3 + $0x8] sm:$0xff]   ;;  %v437_v14 = vld [vmem:[%s628_s3 + $0x10] sm:$0xff]  }
  0x18   :  { %v438_v25 = vld [vmem:[%s628_s3 + $0x18] sm:$0xff]   ;;  %v439_v26 = vld [vmem:[%s628_s3 + $0x20] sm:$0xff]   ;;  %v440_v27 = vld [vmem:[%s628_s3 + $0x28] sm:$0xff]  }
  0x19   :  { %v441_v28 = vld [vmem:[%s628_s3 + $0x30] sm:$0xff]   ;;  %v442_v29 = vld [vmem:[%s628_s3 + $0x38] sm:$0xff]   ;;  %s469_s3 = scalar_lea.vmem %s323_s8, 128 }
  0x1a   :  { %374 = vmatpush3.bf16.msra.mxu0 %v426_v2  ;;  %382 = vmatpush3.bf16.msra.mxu1 %v428_v5  ;;  %p470_p8 = scmp.ne.s32.totalorder %s323_s8, %s469_s3  ;;  %p475_p10 = scmp.lt.s32.totalorder %s469_s3, %s469_s3 }
  0x1b   :  { %399 = vmatprep.subr.bf16.mxu0 %v498_v0  ;;  %383 = vmatprep.subr.bf16.mxu1 %v498_v0 }
  0x1c   :  { %p476_p11 = por %p475_p10, %p474_p9 }
  0x1d   :  { %376 = vmatmul.mubr.msk.bf16.vlgmr.msra.gmra.mrb[0].mxu0 %vm50_vm1, %v33_v4 }
  0x1e   :  { %415 = vmatprep.mubr.msk.bf16.mxu0 %vm499_vm0, %v498_v0  ;;  %384 = vmatpush3.bf16.msra.mxu1 %v429_v6  ;;  %p477_p12 = pnand %p476_p11, %p470_p8 }
  0x1f   :  { %385 = vmatprep.subr.bf16.mxu1 %v498_v0  ;;  %400 = vmatpush3.bf16.msra.mxu0 %v435_v12 }
  0x20   :  { %401 = vmatprep.subr.bf16.mxu0 %v498_v0 }
  0x22   :  { %386 = vmatpush3.bf16.msra.mxu1 %v430_v7 }
  0x23   :  { %387 = vmatprep.subr.bf16.mxu1 %v498_v0  ;;  %402 = vmatpush3.bf16.msra.mxu0 %v436_v13 }
  0x24   :  { %403 = vmatprep.subr.bf16.mxu0 %v498_v0 }
  0x26   :  { %388 = vmatpush3.bf16.msra.mxu1 %v431_v8 }
  0x27   :  { %389 = vmatprep.subr.bf16.mxu1 %v498_v0  ;;  %404 = vmatpush3.bf16.msra.mxu0 %v437_v14 }
  0x28   :  { %405 = vmatprep.subr.bf16.mxu0 %v498_v0 }
  0x2a   :  { %390 = vmatpush3.bf16.msra.mxu1 %v432_v9 }
  0x2b   :  { %391 = vmatprep.subr.bf16.mxu1 %v498_v0  ;;  %406 = vmatpush3.bf16.msra.mxu0 %v438_v25 }
  0x2c   :  { %407 = vmatprep.subr.bf16.mxu0 %v498_v0 }
  0x2e   :  { %392 = vmatpush3.bf16.msra.mxu1 %v433_v10 }
  0x2f   :  { %393 = vmatprep.subr.bf16.mxu1 %v498_v0  ;;  %408 = vmatpush3.bf16.msra.mxu0 %v439_v26 }
  0x30   :  { %409 = vmatprep.subr.bf16.mxu0 %v498_v0 }
  0x32   :  { %394 = vmatpush3.bf16.msra.mxu1 %v434_v11 }
  0x33   :  { %410 = vmatpush3.bf16.msra.mxu0 %v440_v27 }
  0x34   :  { %411 = vmatprep.subr.bf16.mxu0 %v498_v0 }
  0x37   :  { %412 = vmatpush3.bf16.msra.mxu0 %v441_v28 }
  0x38   :  { %413 = vmatprep.subr.bf16.mxu0 %v498_v0 }
  0x3b   :  { %414 = vmatpush3.bf16.msra.mxu0 %v442_v29 }
  0xf0   :  { %v88_v15 = vpop.f32.mrb[0].mxu0 }
  0xf1   :  { %v95_v16 = vmul.f32 0.70710677, %v88_v15  ;;  %v377_v17 = vpop.f32.mrb[1].mxu0  ;;  %v94_v21 = vmul.f32 0.5, %v88_v15 }
  0xf2   :  { %v91_v18 = vpop.f32.mrb[2].mxu0 }
  0xf3   :  { %443 = verf.f32 %v95_v16  ;;  %v378_v19 = vpop.f32.mrb[3].mxu0 }
  0xfd   :  { %v444_v20 = vpop.eup %443 }
  0xfe   :  { %v97_v22 = vadd.f32 1.0, %v444_v20 }
 0x100   :  { %v98_v23 = vmul.f32 %v97_v22, %v94_v21 }
 0x102   :  { %v99_v24 = vpack.c.bf16 %v98_v23, %v98_v23 }
 0x104   :  { %396 = vmatmul.mubr.bf16.vlgmr.msra.gmra.mrb[0].mxu1 %v99_v24 }
 0x1d7   :  { %v198_v30 = vpop.f32.mrb[0].mxu1 }
 0x1d8   :  { %v205_v31 = vmul.f32 0.70710677, %v198_v30  ;;  %v397_v32 = vpop.f32.mrb[1].mxu1  ;;  %v204_v36 = vmul.f32 0.5, %v198_v30 }
 0x1d9   :  { %v201_v33 = vpop.f32.mrb[2].mxu1 }
 0x1da   :  { %445 = verf.f32 %v205_v31  ;;  %v398_v34 = vpop.f32.mrb[3].mxu1 }
 0x1e4   :  { %v446_v35 = vpop.eup %445 }
 0x1e5   :  { %v207_v37 = vadd.f32 1.0, %v446_v35 }
 0x1e7   :  { %v208_v38 = vmul.f32 %v207_v37, %v204_v36 }
 0x1e9   :  { %v209_v39 = vpack.c.bf16 %v208_v38, %v208_v38 }
 0x1eb   :  { %416 = vmatmul.mubr.bf16.vlgmr.msra.gmra.mrb[4].mxu0 %v209_v39 }
 0x2be   :  { %v308_v40 = vpop.f32.mrb[4].mxu0 }
 0x2bf   :  { %v417_v41 = vpop.f32.mrb[5].mxu0  ;;  %315 = vst.msk [vmem:[#allocation5] sm:$0xff] %vm314_vm2, %v308_v40 }
 0x2c0   :  { %v311_v42 = vpop.f32.mrb[6].mxu0 }
 0x2c1   :  { %480 = shalt.err (!%p477_p12)
}
 0x2c2   :  { %s481_s10 = scalar_lea.hbm %s629_s4, 128 }
 0x2c3   :  { %p482_p13 = scmp.ne.s32.totalorder %s629_s4, %s481_s10  ;;  %p485_p0 = scmp.lt.u32.totalorder %s481_s10, %s629_s4 }
 0x2c5   :  { %p487_p1 = pnand %p485_p0, %p482_p13 }
 0x2c7   :  { %490 = shalt.err (!%p487_p1)
}
 0x2c8   :  { %325 = dma.vmem_to_hbm [thread:$0]  %s323_s8, 128, %s629_s4, [#allocation4]   ;;  %v418_v43 = vpop.f32.mrb[7].mxu0 }
 0x2c9   :  { %493 = dma.done.wait [#allocation4], 128  }
 0x2ca   :  { %494 = vsyncadd [#allocation4], 4294967168 }
 0x2cb   :  { %329 = vsyncpa [#allocation3], 1 }
 0x2cc   :  { %330 = vsyncpa [#allocation4], 1 }

</bundles_post_ra>
